<compile_context>
chip_gen: v5e
topology: v5e:2x2
jax: 0.10.0
libtpu: 0.0.40
codegen_flags: <defaults>
</compile_context>

<pallas_src>
import jax
import jax.numpy as jnp
from jax.experimental import pallas as pl
from jax.experimental.pallas import tpu as pltpu

_MIB = 1024 * 1024


def _round_up(x, m):
    return (x + m - 1) // m * m


def _cdiv(a, b):
    return (a + b - 1) // b


def _vmem_capacity_bytes():
    """Physical VMEM of the attached TPU (conservative 64 MiB fallback = v7x per-TC)."""
    try:
        return int(pltpu.get_tpu_info().vmem_capacity_bytes)
    except Exception:
        return 64 * _MIB


def _pad_cast(a, shape, dtype):
    """Cast + zero-pad `a` to (shape, dtype); skips the copy when already aligned."""
    a = jnp.asarray(a)
    if a.shape == tuple(shape):
        return a if a.dtype == jnp.dtype(dtype) else a.astype(dtype)
    out = jnp.zeros(shape, dtype)
    return out.at[tuple(slice(0, s) for s in a.shape)].set(a.astype(dtype))


# ----------------------------- kernels -------------------------------------------


def _ffn_kernel_resident(x_ref, w1_ref, b1_ref, w2_ref, b2_ref, o_ref):
    """relu(x @ w1 + b1) @ w2 + b2 with both weights VMEM-resident (grid = rows only)."""
    h = jnp.dot(x_ref[...], w1_ref[...], preferred_element_type=jnp.float32)
    h = jnp.maximum(h + b1_ref[...], 0.0)
    # Dropout == identity (eval mode).
    # TODO(synk): training-mode dropout would need an in-kernel keep-mask via
    # pltpu.prng_seed + pltpu.prng_random_bits and a 1/(1-p) rescale.
    acc = jnp.dot(h.astype(w2_ref.dtype), w2_ref[...],
                  preferred_element_type=jnp.float32)
    o_ref[...] = (acc + b2_ref[...]).astype(o_ref.dtype)


def _ffn_kernel_stream_f32(x_ref, w1_ref, b1_ref, w2_ref, b2_ref, o_ref):
    """d_ff-streamed variant, f32 output: accumulate directly into the resident o block."""
    k = pl.program_id(1)

    @pl.when(k == 0)
    def _():
        o_ref[...] = jnp.zeros_like(o_ref) + b2_ref[...]

    h = jnp.dot(x_ref[...], w1_ref[...], preferred_element_type=jnp.float32)
    h = jnp.maximum(h + b1_ref[...], 0.0)
    o_ref[...] += jnp.dot(h.astype(w2_ref.dtype), w2_ref[...],
                          preferred_element_type=jnp.float32)


def _ffn_kernel_stream_acc(x_ref, w1_ref, b1_ref, w2_ref, b2_ref, o_ref, acc_ref):
    """d_ff-streamed variant, non-f32 output: f32 VMEM accumulator, cast on last step."""
    k = pl.program_id(1)

    @pl.when(k == 0)
    def _():
        acc_ref[...] = jnp.zeros_like(acc_ref)

    h = jnp.dot(x_ref[...], w1_ref[...], preferred_element_type=jnp.float32)
    h = jnp.maximum(h + b1_ref[...], 0.0)
    acc_ref[...] += jnp.dot(h.astype(w2_ref.dtype), w2_ref[...],
                            preferred_element_type=jnp.float32)

    @pl.when(k == pl.num_programs(1) - 1)
    def _():
        o_ref[...] = (acc_ref[...] + b2_ref[...]).astype(o_ref.dtype)


# ----------------------------- wrapper -------------------------------------------


def feed_forward_block(x, w1, b1, w2, b2, *, tm=None, tf=None,
                       compute_dtype=jnp.bfloat16, force_stream=False,
                       vmem_limit_bytes=None):
    """Fused Linear -> ReLU -> (Dropout == id, eval) -> Linear.

    x : (..., d_model)
    w1: (d_model, d_ff)   b1: (d_ff,) or (1, d_ff)   (pre-transposed vs nn.Linear)
    w2: (d_ff, d_model)   b2: (d_model,) or (1, d_model)
    Returns an array with the same shape/dtype as x.
    """
    orig_shape = x.shape
    d_model = orig_shape[-1]
    d_ff = w1.shape[1]
    out_dtype = x.dtype
    out_is_f32 = (out_dtype == jnp.float32)

    x2d = x.reshape(-1, d_model)
    M = x2d.shape[0]

    cdt = jnp.dtype(compute_dtype)
    wbytes = cdt.itemsize
    obytes = jnp.dtype(out_dtype).itemsize

    d_model_p = _round_up(d_model, 128)
    d_ff_p = _round_up(d_ff, 128)

    # --- per-generation VMEM budget -------------------------------------------
    cap = _vmem_capacity_bytes()
    small_vmem = cap <= 64 * _MIB                      # v7x-class part (64 MiB / TC)
    if vmem_limit_bytes is None:
        vmem_limit_bytes = min(int(cap * 0.90), 110 * _MIB)
    budget = int(vmem_limit_bytes * 0.80)              # headroom for accounting error
    tm_target = 384 if small_vmem else 512

    bias_bytes = 2 * 8 * (d_ff_p + d_model_p) * 4      # sublane-padded f32 biases, 2 bufs

    def per_row(tf_val, need_acc):
        b = 2 * d_model_p * wbytes                     # x tile (double-buffered)
        b += 2 * d_model_p * obytes                    # out tile (double-buffered)
        b += tf_val * 4                                # h intermediate (f32)
        if need_acc:
            b += d_model_p * 4                         # f32 accumulator scratch
        return b

    # --- schedule selection: weights resident vs. d_ff-streamed ----------------
    # Resident => single k step, constant weight block indices => one weight DMA
    # per launch.  Budget 2x because the pipeline still double-buffers the blocks.
    w_resident = 2 * 2 * d_model_p * d_ff_p * wbytes
    rows_min = min(_round_up(M, 16), 128)
    resident_ok = (not force_stream) and (
        w_resident + bias_bytes + rows_min * per_row(d_ff_p, False) <= budget)

    if resident_ok:
        tf_val = d_ff_p
        d_ff_pad = d_ff_p
        fixed = w_resident + bias_bytes
        need_acc = False
    else:
        if tf is not None:
            tf_val = _round_up(tf, 128)
        else:
            # tf = divisor of d_ff_p (multiple of 128) near 1024 -> no zero-column waste.
            units = d_ff_p // 128
            cands = [128 * d for d in range(1, units + 1) if units % d == 0]

            def fits(t):
                fx = 2 * 2 * d_model_p * t * wbytes + bias_bytes
                return fx + rows_min * per_row(t, not out_is_f32) <= budget

            good = [t for t in cands if fits(t)]
            if good:
                le = [t for t in good if t <= 1024]
                tf_val = max(le) if le else min(good)
            else:
                tf_val = 128
        d_ff_pad = _round_up(d_ff_p, tf_val)
        fixed = 2 * 2 * d_model_p * tf_val * wbytes + bias_bytes
        need_acc = not out_is_f32

    # --- row tile ---------------------------------------------------------------
    if tm is None:
        tm_max = max(16, (budget - fixed) // per_row(tf_val, need_acc))
        tm_val = min(tm_target, tm_max)
    else:
        tm_val = tm
    tm_val = min(tm_val, _round_up(M, 16))
    tm_val = max(16, tm_val - tm_val % 16)
    if small_vmem and tm is None:
        # v7x has 2 TensorCores/chip: make sure the 'parallel' row axis has >= 2 tiles.
        while tm_val > 128 and _cdiv(M, tm_val) < 2:
            tm_val = max(128, _round_up(tm_val // 2, 16))
    M_p = _round_up(M, tm_val)
    n_rows = M_p // tm_val
    k_steps = d_ff_pad // tf_val

    # --- pad/cast operands (no-op when already aligned; hoistable by callers) ----
    xp = _pad_cast(x2d, (M_p, d_model_p), cdt)
    w1p = _pad_cast(w1, (d_model_p, d_ff_pad), cdt)
    b1p = _pad_cast(jnp.asarray(b1, jnp.float32).reshape(1, -1), (1, d_ff_pad), jnp.float32)
    w2p = _pad_cast(w2, (d_ff_pad, d_model_p), cdt)
    b2p = _pad_cast(jnp.asarray(b2, jnp.float32).reshape(1, -1), (1, d_model_p), jnp.float32)

    # --- cost estimate: weights charged per re-stream ----------------------------
    weight_passes = 1 if k_steps == 1 else n_rows
    cost = pl.CostEstimate(
        flops=4 * M_p * d_model_p * d_ff_pad,
        transcendentals=0,
        bytes_accessed=int(
            M_p * d_model_p * (wbytes + obytes)
            + weight_passes * 2 * d_model_p * d_ff_pad * wbytes
            + (d_ff_pad + d_model_p) * 4),
    )

    if k_steps == 1 and not force_stream:
        grid = (n_rows,)
        in_specs = [
            pl.BlockSpec((tm_val, d_model_p), lambda i: (i, 0)),     # x row tile
            pl.BlockSpec((d_model_p, d_ff_pad), lambda i: (0, 0)),   # w1 (resident)
            pl.BlockSpec((1, d_ff_pad), lambda i: (0, 0)),           # b1 (resident)
            pl.BlockSpec((d_ff_pad, d_model_p), lambda i: (0, 0)),   # w2 (resident)
            pl.BlockSpec((1, d_model_p), lambda i: (0, 0)),          # b2 (resident)
        ]
        out_specs = pl.BlockSpec((tm_val, d_model_p), lambda i: (i, 0))
        scratch = []
        kernel = _ffn_kernel_resident
        dims = ("parallel",)
    else:
        grid = (n_rows, k_steps)
        in_specs = [
            pl.BlockSpec((tm_val, d_model_p), lambda i, k: (i, 0)),  # x row tile
            pl.BlockSpec((d_model_p, tf_val), lambda i, k: (0, k)),  # w1 d_ff chunk
            pl.BlockSpec((1, tf_val), lambda i, k: (0, k)),          # b1 chunk
            pl.BlockSpec((tf_val, d_model_p), lambda i, k: (k, 0)),  # w2 d_ff chunk
            pl.BlockSpec((1, d_model_p), lambda i, k: (0, 0)),       # b2
        ]
        out_specs = pl.BlockSpec((tm_val, d_model_p), lambda i, k: (i, 0))
        if out_is_f32:
            kernel = _ffn_kernel_stream_f32                          # accumulate in o_ref
            scratch = []
        else:
            kernel = _ffn_kernel_stream_acc
            scratch = [pltpu.VMEM((tm_val, d_model_p), jnp.float32)]
        dims = ("parallel", "arbitrary")

    out = pl.pallas_call(
        kernel,
        out_shape=jax.ShapeDtypeStruct((M_p, d_model_p), out_dtype),
        grid_spec=pltpu.PrefetchScalarGridSpec(
            num_scalar_prefetch=0,
            grid=grid,
            in_specs=in_specs,
            out_specs=out_specs,
            scratch_shapes=scratch,
        ),
        compiler_params=pltpu.CompilerParams(
            dimension_semantics=dims,
            vmem_limit_bytes=int(vmem_limit_bytes)),
        cost_estimate=cost,
    )(xp, w1p, b1p, w2p, b2p)

    return out[:M, :d_model].reshape(orig_shape)


def init_params(key, d_model, d_ff, dtype=jnp.float32):
    """Deterministic synthetic init (shapes match nn.Linear weights, pre-transposed)."""
    k1, k2, k3, k4 = jax.random.split(key, 4)
    s1 = 1.0 / jnp.sqrt(d_model)
    s2 = 1.0 / jnp.sqrt(d_ff)
    w1 = jax.random.uniform(k1, (d_model, d_ff), dtype, -s1, s1)
    b1 = jax.random.uniform(k2, (1, d_ff), dtype, -s1, s1)
    w2 = jax.random.uniform(k3, (d_ff, d_model), dtype, -s2, s2)
    b2 = jax.random.uniform(k4, (1, d_model), dtype, -s2, s2)
    return w1, b1, w2, b2


if __name__ == "__main__":
    batch, seq, d_model, d_ff = 2, 8, 32, 256
    key = jax.random.PRNGKey(0)
    kx, kp = jax.random.split(key)

    x = jax.random.normal(kx, (batch, seq, d_model), jnp.float32)
    w1, b1, w2, b2 = init_params(kp, d_model, d_ff)

    # fp32 reference (dropout == identity in eval mode).
    x2d = x.reshape(-1, d_model)
    ref = (jnp.maximum(x2d @ w1 + b1, 0.0) @ w2 + b2).reshape(x.shape)

    # 1) Default schedule: weights VMEM-resident, single k step.
    out = feed_forward_block(x, w1, b1, w2, b2)
    jax.block_until_ready(out)
    assert out.shape == x.shape and out.dtype == x.dtype
    assert jnp.allclose(out, ref, atol=2e-2, rtol=2e-2), "resident path mismatch"

    # 2) Streamed schedule (d_ff tiled on the 'arbitrary' axis; f32 output accumulates
    #    directly in the resident output block).
    out_s = feed_forward_block(x, w1, b1, w2, b2, force_stream=True, tf=128)
    jax.block_until_ready(out_s)
    assert jnp.allclose(out_s, ref, atol=2e-2, rtol=2e-2), "stream(f32) path mismatch"

    # 3) Streamed schedule with a non-f32 output dtype (uses the f32 VMEM accumulator).
    out_b = feed_forward_block(x.astype(jnp.bfloat16), w1, b1, w2, b2,
                               force_stream=True, tf=128)
    jax.block_until_ready(out_b)
    assert out_b.dtype == jnp.bfloat16
    assert jnp.allclose(out_b.astype(jnp.float32), ref, atol=1e-1, rtol=1e-1), \
        "stream(bf16) path mismatch"

    print("KERNEL_OK")
</pallas_src>

<mosaic_0001>
module attributes {stable_mosaic.version = 11 : i64} {
  func.func @_ffn_kernel_resident(%arg0: i32, %arg1: memref<16x128xbf16, #tpu.memory_space<vmem>>, %arg2: memref<128x256xbf16, #tpu.memory_space<vmem>>, %arg3: memref<1x256xf32, #tpu.memory_space<vmem>>, %arg4: memref<256x128xbf16, #tpu.memory_space<vmem>>, %arg5: memref<1x128xf32, #tpu.memory_space<vmem>>, %arg6: memref<16x128xf32, #tpu.memory_space<vmem>>) attributes {dimension_semantics = [#tpu.dimension_semantics<parallel>], iteration_bounds = array<i64: 1>, scalar_prefetch = 0 : i64, scratch_operands = 0 : i64, tpu.core_type = #tpu.core_type<tc>, window_params = [{transform_indices = @transform_0, window_bounds = array<i64: 16, 128>}, {pipeline_mode = #tpu.pipeline_mode<synchronous>, transform_indices = @transform_1, window_bounds = array<i64: 128, 256>}, {pipeline_mode = #tpu.pipeline_mode<synchronous>, transform_indices = @transform_2, window_bounds = array<i64: 1, 256>}, {pipeline_mode = #tpu.pipeline_mode<synchronous>, transform_indices = @transform_3, window_bounds = array<i64: 256, 128>}, {pipeline_mode = #tpu.pipeline_mode<synchronous>, transform_indices = @transform_4, window_bounds = array<i64: 1, 128>}, {transform_indices = @transform_5, window_bounds = array<i64: 16, 128>}]} {
    %c0 = arith.constant 0 : index
    %c0_0 = arith.constant 0 : index
    %0 = vector.load %arg1[%c0, %c0_0] : memref<16x128xbf16, #tpu.memory_space<vmem>>, vector<16x128xbf16>
    %c0_1 = arith.constant 0 : index
    %c0_2 = arith.constant 0 : index
    %1 = vector.load %arg2[%c0_1, %c0_2] : memref<128x256xbf16, #tpu.memory_space<vmem>>, vector<128x256xbf16>
    %cst = arith.constant dense<0.000000e+00> : vector<16x256xf32>
    %2 = tpu.matmul %0, %1, %cst {dimension_numbers = #tpu.dot_dimension_numbers<[1], [0], [0], [1], [0, 0, 1, 1], [], []>} : vector<16x128xbf16>, vector<128x256xbf16>, vector<16x256xf32> -> vector<16x256xf32>
    %c0_3 = arith.constant 0 : index
    %c0_4 = arith.constant 0 : index
    %3 = vector.load %arg3[%c0_3, %c0_4] : memref<1x256xf32, #tpu.memory_space<vmem>>, vector<1x256xf32>
    %4 = vector.broadcast %3 : vector<1x256xf32> to vector<16x256xf32>
    %5 = arith.addf %2, %4 : vector<16x256xf32>
    %cst_5 = arith.constant 0.000000e+00 : f32
    %6 = vector.broadcast %cst_5 : f32 to vector<16x256xf32>
    %7 = arith.maximumf %5, %6 : vector<16x256xf32>
    %8 = arith.truncf %7 : vector<16x256xf32> to vector<16x256xbf16>
    %c0_6 = arith.constant 0 : index
    %c0_7 = arith.constant 0 : index
    %9 = vector.load %arg4[%c0_6, %c0_7] : memref<256x128xbf16, #tpu.memory_space<vmem>>, vector<256x128xbf16>
    %cst_8 = arith.constant dense<0.000000e+00> : vector<16x128xf32>
    %10 = tpu.matmul %8, %9, %cst_8 {dimension_numbers = #tpu.dot_dimension_numbers<[1], [0], [0], [1], [0, 0, 1, 1], [], []>} : vector<16x256xbf16>, vector<256x128xbf16>, vector<16x128xf32> -> vector<16x128xf32>
    %c0_9 = arith.constant 0 : index
    %c0_10 = arith.constant 0 : index
    %11 = vector.load %arg5[%c0_9, %c0_10] : memref<1x128xf32, #tpu.memory_space<vmem>>, vector<1x128xf32>
    %12 = vector.broadcast %11 : vector<1x128xf32> to vector<16x128xf32>
    %13 = arith.addf %10, %12 : vector<16x128xf32>
    %c0_11 = arith.constant 0 : index
    %c0_12 = arith.constant 0 : index
    %14 = vector.load %arg6[%c0_11, %c0_12] : memref<16x128xf32, #tpu.memory_space<vmem>>, vector<16x128xf32>
    tpu.vector_store %arg6[%c0_11, %c0_12], %13 {strides = array<i32>} : memref<16x128xf32, #tpu.memory_space<vmem>>, vector<16x128xf32>,
    return
  }
  func.func @transform_0(%arg0: i32) -> (i32, i32) {
    %c0_i32 = arith.constant 0 : i32
    %c0_i32_0 = arith.constant 0 : i32
    return %arg0, %c0_i32 : i32, i32
  }
  func.func @transform_1(%arg0: i32) -> (i32, i32) {
    %c0_i32 = arith.constant 0 : i32
    %c0_i32_0 = arith.constant 0 : i32
    %c0_i32_1 = arith.constant 0 : i32
    return %c0_i32, %c0_i32_0 : i32, i32
  }
  func.func @transform_2(%arg0: i32) -> (i32, i32) {
    %c0_i32 = arith.constant 0 : i32
    %c0_i32_0 = arith.constant 0 : i32
    %c0_i32_1 = arith.constant 0 : i32
    return %c0_i32, %c0_i32_0 : i32, i32
  }
  func.func @transform_3(%arg0: i32) -> (i32, i32) {
    %c0_i32 = arith.constant 0 : i32
    %c0_i32_0 = arith.constant 0 : i32
    %c0_i32_1 = arith.constant 0 : i32
    return %c0_i32, %c0_i32_0 : i32, i32
  }
  func.func @transform_4(%arg0: i32) -> (i32, i32) {
    %c0_i32 = arith.constant 0 : i32
    %c0_i32_0 = arith.constant 0 : i32
    %c0_i32_1 = arith.constant 0 : i32
    return %c0_i32, %c0_i32_0 : i32, i32
  }
  func.func @transform_5(%arg0: i32) -> (i32, i32) {
    %c0_i32 = arith.constant 0 : i32
    %c0_i32_0 = arith.constant 0 : i32
    return %arg0, %c0_i32 : i32, i32
  }
}

</mosaic_0001>

<bundles_post_ra>
// kernel: tpu_custom_call.1
= control target key start
LH: loop header
LB: loop body
LE: loop exit
PB: predicated region body
PF: predicated region fallthrough
CT: control target
= control target key end

     0   :  { %10 = vsyncpa [#allocation3], 0  ;;  %s775_s0 = inlined_call_operand.hbm [shape: bf16[16,128], index: 0, kind: input, shape index: {}]   ;;  %s776_s1 = inlined_call_operand.hbm [shape: bf16[128,256], index: 1, kind: input, shape index: {}]   ;;  %s777_s2 = inlined_call_operand.hbm [shape: f32[1,256], index: 2, kind: input, shape index: {}]   ;;  %s778_s3 = inlined_call_operand.hbm [shape: bf16[256,128], index: 3, kind: input, shape index: {}]   ;;  %s779_s4 = inlined_call_operand.vmem [shape: f32[1,128], index: 4, kind: input, shape index: {}]   ;;  %s780_s5 = inlined_call_operand.hbm [shape: f32[16,128], index: 5, kind: output, shape index: {}]  }
   0x1   :  { %11 = vsyncpa [#allocation6], 0 }
   0x2   :  { %12 = vsyncpa [#allocation9], 0  ;;  %s31_s20 = sshll.u32 %s776_s1, 4  ;;  %s32_s20 = int_to_ptr.hbm [resolvable:$true] %s31_s20 }
   0x3   :  { %13 = vsyncpa [#allocation4], 0  ;;  %s712_s21 = smov [#allocation5]   ;;  %s18_s25 = sshll.u32 %s775_s0, 4  ;;  %s19_s25 = int_to_ptr.hbm [resolvable:$true] %s18_s25 }
   0x4   :  { %s33_s22 = sshll.u32 %s712_s21, 4  ;;  %s713_s26 = smov 128   ;;  %s34_s22 = int_to_ptr.vmem [resolvable:$true] %s33_s22 }
   0x5   :  { %s714_s27 = smov 8   ;;  %s715_s28 = smov [#allocation2]  }
   0x6   :  { %39 = dma.hbm_to_vmem [thread:$0]  %s32_s20, 2048, %s34_s22, [#allocation6], %s713_s26, %s713_s26, %s714_s27  }
   0x7   :  { %s20_s29 = sshll.u32 %s715_s28, 4  ;;  %s716_s1 = smov 64   ;;  %s21_s29 = int_to_ptr.vmem [resolvable:$true] %s20_s29 }
   0x8   :  { %s717_s30 = smov 4   ;;  %s45_s8 = sshll.u32 %s777_s2, 4  ;;  %s46_s8 = int_to_ptr.hbm [resolvable:$true] %s45_s8 }
   0x9   :  { %26 = dma.hbm_to_vmem [thread:$0]  %s19_s25, 128, %s21_s29, [#allocation3], %s716_s1, %s716_s1, %s717_s30  }
   0xa   :  { %s718_s9 = smov [#allocation7]   ;;  %s55_s12 = sshll.u32 %s778_s3, 4  ;;  %s56_s12 = int_to_ptr.hbm [resolvable:$true] %s55_s12 }
   0xb   :  { %s47_s0 = sshll.u32 %s718_s9, 4  ;;  %s719_s13 = smov [#allocation8]   ;;  %s48_s0 = int_to_ptr.vmem [resolvable:$true] %s47_s0 }
   0xc   :  { %50 = dma.hbm_to_vmem [thread:$0]  %s46_s8, 32, %s48_s0, [#allocation6]  }
   0xd   :  { %s57_s14 = sshll.u32 %s719_s13, 4  ;;  %s58_s14 = int_to_ptr.vmem [resolvable:$true] %s57_s14 }
   0xe   :  { %63 = dma.hbm_to_vmem [thread:$0]  %s56_s12, 2048, %s58_s14, [#allocation9], %s716_s1, %s716_s1, %s717_s30  }
   0xf   :  { %704 = dma.done.wait [#allocation3], 128  }
  0x10   :  { %705 = vsyncadd [#allocation3], 4294967168 }
  0x11   :  { %706 = dma.done.wait [#allocation6], 2080  }
  0x12   :  { %707 = vsyncadd [#allocation6], 4294965216 }
  0x13   :  { %708 = dma.done.wait [#allocation9], 2048  }
  0x14   :  { %709 = vsyncadd [#allocation9], 4294965248  ;;  %v471_v0 = vld [vmem:[#allocation5 + $0x70] sm:$0xf]  ;;  %v557_v1 = vld [vmem:[#allocation5 + $0x74] sm:$0xf0] }
  0x15   :  { %v556_v2 = vld [vmem:[#allocation5 + $0x74] sm:$0xf]  ;;  %v472_v3 = vor.u32 %v557_v1, %v471_v0  ;;  %v473_v4 = vld [vmem:[#allocation5 + $0x78] sm:$0xf0]  ;;  %v463_v5 = vld [vmem:[#allocation5 + $0x60] sm:$0xf] }
  0x16   :  { %v555_v6 = vld [vmem:[#allocation5 + $0x64] sm:$0xf0]  ;;  %v476_v7 = vor.u32 %v556_v2, %v473_v4  ;;  %v554_v8 = vld [vmem:[#allocation5 + $0x64] sm:$0xf]  ;;  %v465_v9 = vld [vmem:[#allocation5 + $0x68] sm:$0xf0] }
  0x17   :  { %192 = vmatpush.bf16.msra.mxu0 %v472_v3  ;;  %v464_v10 = vor.u32 %v555_v6, %v463_v5  ;;  %v468_v11 = vor.u32 %v554_v8, %v465_v9  ;;  %v455_v12 = vld [vmem:[#allocation5 + $0x50] sm:$0xf]  ;;  %v553_v13 = vld [vmem:[#allocation5 + $0x54] sm:$0xf0]  ;;  %v552_v14 = vld [vmem:[#allocation5 + $0x54] sm:$0xf] }
  0x18   :  { %206 = vmatpush.bf16.msra.mxu1 %v476_v7  ;;  %v457_v15 = vld [vmem:[#allocation5 + $0x58] sm:$0xf0]  ;;  %v456_v16 = vor.u32 %v553_v13, %v455_v12  ;;  %v447_v18 = vld [vmem:[#allocation5 + $0x40] sm:$0xf]  ;;  %v551_v19 = vld [vmem:[#allocation5 + $0x44] sm:$0xf0] }
  0x19   :  { %v460_v17 = vor.u32 %v552_v14, %v457_v15  ;;  %v550_v20 = vld [vmem:[#allocation5 + $0x44] sm:$0xf]  ;;  %v449_v21 = vld [vmem:[#allocation5 + $0x48] sm:$0xf0]  ;;  %v448_v22 = vor.u32 %v551_v19, %v447_v18  ;;  %v565_v23 = vld [vmem:[#allocation8 + $0x38] sm:$0xff]  ;;  %s720_s15 = smov [#allocation10]  }
  0x1a   :  { %v573_v24 = vld [vmem:[#allocation8 + $0x78] sm:$0xff]  ;;  %v452_v25 = vor.u32 %v550_v20, %v449_v21  ;;  %v439_v26 = vld [vmem:[#allocation5 + $0x30] sm:$0xf]  ;;  %v548_v28 = vld [vmem:[#allocation5 + $0x34] sm:$0xf]  ;;  %358 = vmatpush.bf16.msra.mxu2 %v565_v23  ;;  %s392_s16 = sshll.u32 %s720_s15, 4  ;;  %s393_s16 = int_to_ptr.vmem [resolvable:$true] %s392_s16 }
  0x1b   :  { %193 = vmatpush.bf16.msra.mxu0 %v464_v10  ;;  %v549_v27 = vld [vmem:[#allocation5 + $0x34] sm:$0xf0]  ;;  %v441_v29 = vld [vmem:[#allocation5 + $0x38] sm:$0xf0]  ;;  %372 = vmatpush.bf16.msra.mxu3 %v573_v24  ;;  %v431_v34 = vld [vmem:[#allocation5 + $0x20] sm:$0xf] }
  0x1c   :  { %207 = vmatpush.bf16.msra.mxu1 %v468_v11  ;;  %v564_v30 = vld [vmem:[#allocation8 + $0x30] sm:$0xff]  ;;  %v440_v32 = vor.u32 %v549_v27, %v439_v26  ;;  %v444_v33 = vor.u32 %v548_v28, %v441_v29  ;;  %v547_v35 = vld [vmem:[#allocation5 + $0x24] sm:$0xf0]  ;;  %v546_v36 = vld [vmem:[#allocation5 + $0x24] sm:$0xf]  ;;  %s394_s19 = sshll.u32 %s780_s5, 4  ;;  %s395_s19 = int_to_ptr.hbm [resolvable:$true] %s394_s19 }
  0x1d   :  { %v572_v31 = vld [vmem:[#allocation8 + $0x70] sm:$0xff]  ;;  %v433_v37 = vld [vmem:[#allocation5 + $0x28] sm:$0xf0]  ;;  %v432_v40 = vor.u32 %v547_v35, %v431_v34  ;;  %v425_v45 = vld [vmem:[#allocation5 + $0x18] sm:$0xf0] }
  0x1e   :  { %359 = vmatpush.bf16.msra.mxu2 %v564_v30  ;;  %v563_v38 = vld [vmem:[#allocation8 + $0x28] sm:$0xff]  ;;  %v436_v41 = vor.u32 %v546_v36, %v433_v37  ;;  %v545_v43 = vld [vmem:[#allocation5 + $0x14] sm:$0xf0]  ;;  %v544_v44 = vld [vmem:[#allocation5 + $0x14] sm:$0xf] }
  0x1f   :  { %194 = vmatpush.bf16.msra.mxu0 %v456_v16  ;;  %373 = vmatpush.bf16.msra.mxu3 %v572_v31  ;;  %v571_v39 = vld [vmem:[#allocation8 + $0x68] sm:$0xff]  ;;  %v562_v46 = vld [vmem:[#allocation8 + $0x20] sm:$0xff]  ;;  %v428_v49 = vor.u32 %v544_v44, %v425_v45  ;;  %v541_v56 = vld [vmem:[#allocation2] sm:$0xff] }
  0x20   :  { %208 = vmatpush.bf16.msra.mxu1 %v460_v17  ;;  %v423_v42 = vld [vmem:[#allocation5 + $0x10] sm:$0xf]  ;;  %v570_v47 = vld [vmem:[#allocation8 + $0x60] sm:$0xff]  ;;  %v417_v53 = vld [vmem:[#allocation5 + $0x8] sm:$0xf0] }
  0x21   :  { %v424_v48 = vor.u32 %v545_v43, %v423_v42  ;;  %v415_v50 = vld [vmem:[#allocation5] sm:$0xf]  ;;  %v543_v51 = vld [vmem:[#allocation5 + $0x4] sm:$0xf0]  ;;  %v542_v52 = vld [vmem:[#allocation5 + $0x4] sm:$0xf] }
  0x22   :  { %360 = vmatpush.bf16.msra.mxu2 %v563_v38  ;;  %v416_v54 = vor.u32 %v543_v51, %v415_v50  ;;  %v420_v55 = vor.u32 %v542_v52, %v417_v53  ;;  %v561_v57 = vld [vmem:[#allocation8 + $0x18] sm:$0xff]  ;;  %v560_v59 = vld [vmem:[#allocation8 + $0x10] sm:$0xff]  ;;  %v559_v61 = vld [vmem:[#allocation8 + $0x8] sm:$0xff] }
  0x23   :  { %195 = vmatpush.bf16.msra.mxu0 %v448_v22  ;;  %374 = vmatpush.bf16.msra.mxu3 %v571_v39  ;;  %v569_v58 = vld [vmem:[#allocation8 + $0x58] sm:$0xff]  ;;  %v568_v60 = vld [vmem:[#allocation8 + $0x50] sm:$0xff]  ;;  %v567_v62 = vld [vmem:[#allocation8 + $0x48] sm:$0xff] }
  0x24   :  { %209 = vmatpush.bf16.msra.mxu1 %v452_v25  ;;  %v558_v63 = vld [vmem:[#allocation8] sm:$0xff]  ;;  %v100_v1 = vld [vmem:[#allocation7] sm:$0x3]  ;;  %v583_v18 = vld [vmem:[%s779_s4] ss:$0 sm:$0xff] }
  0x25   :  { %v566_v0 = vld [vmem:[#allocation8 + $0x40] sm:$0xff]  ;;  %v102_v4 = vperm.slane %v100_v1, 0  ;;  %v103_v5 = vperm.slane %v100_v1, 1 }
  0x26   :  { %361 = vmatpush.bf16.msra.mxu2 %v562_v46 }
  0x27   :  { %196 = vmatpush.bf16.msra.mxu0 %v440_v32  ;;  %375 = vmatpush.bf16.msra.mxu3 %v570_v47 }
  0x28   :  { %210 = vmatpush.bf16.msra.mxu1 %v444_v33 }
  0x2a   :  { %362 = vmatpush.bf16.msra.mxu2 %v561_v57 }
  0x2b   :  { %197 = vmatpush.bf16.msra.mxu0 %v432_v40  ;;  %376 = vmatpush.bf16.msra.mxu3 %v569_v58 }
  0x2c   :  { %211 = vmatpush.bf16.msra.mxu1 %v436_v41 }
  0x2e   :  { %363 = vmatpush.bf16.msra.mxu2 %v560_v59 }
  0x2f   :  { %198 = vmatpush.bf16.msra.mxu0 %v424_v48  ;;  %377 = vmatpush.bf16.msra.mxu3 %v568_v60 }
  0x30   :  { %212 = vmatpush.bf16.msra.mxu1 %v428_v49 }
  0x32   :  { %364 = vmatpush.bf16.msra.mxu2 %v559_v61 }
  0x33   :  { %199 = vmatpush.bf16.msra.mxu0 %v416_v54  ;;  %378 = vmatpush.bf16.msra.mxu3 %v567_v62 }
  0x34   :  { %213 = vmatpush.bf16.msra.mxu1 %v420_v55 }
  0x36   :  { %200 = vmatmul.bf16.vlgmr.msra.gmra.mxu0 %v541_v56  ;;  %365 = vmatpush.bf16.msra.mxu2 %v558_v63 }
  0x37   :  { %214 = vmatmul.bf16.vlgmr.msra.gmra.mxu1 %v541_v56  ;;  %379 = vmatpush.bf16.msra.mxu3 %v566_v0 }
  0xb3   :  { %v201_v2 = vpop.f32.mrf.mxu0 }
  0xb4   :  { %v215_v3 = vpop.f32.mrf.mxu1  ;;  %v202_v6 = vadd.f32 %v201_v2, %v102_v4 }
  0xb5   :  { %v216_v7 = vadd.f32 %v215_v3, %v103_v5 }
  0xb6   :  { %v220_v12 = vmax.f32 %v202_v6, 0.0 }
  0xb7   :  { %v221_v14 = vmax.f32 %v216_v7, 0.0 }
  0xbb   :  { %v203_v8 = vpop.f32.mrf.mxu0 }
  0xbc   :  { %v204_v9 = vadd.f32 %v203_v8, %v102_v4  ;;  %v217_v10 = vpop.f32.mrf.mxu1 }
  0xbd   :  { %v218_v11 = vadd.f32 %v217_v10, %v103_v5 }
  0xbe   :  { %v222_v13 = vmax.f32 %v204_v9, 0.0 }
  0xbf   :  { %v223_v15 = vmax.f32 %v218_v11, 0.0 }
  0xc0   :  { %v224_v16 = vpack.c.bf16 %v222_v13, %v220_v12 }
  0xc1   :  { %v225_v17 = vpack.c.bf16 %v223_v15, %v221_v14 }
  0xc2   :  { %366 = vmatmul.bf16.vlgmr.msra.gmra.mxu2 %v224_v16 }
  0xc3   :  { %380 = vmatmul.bf16.vlgmr.msra.gmra.mxu3 %v225_v17 }
 0x145   :  { %v367_v19 = vpop.f32.mrf.mxu2 }
 0x146   :  { %v368_v20 = vadd.f32 %v583_v18, %v367_v19  ;;  %v381_v21 = vpop.f32.mrf.mxu3 }
 0x148   :  { %v382_v22 = vadd.f32 %v381_v21, %v368_v20 }
 0x14a   :  { %386 = vst [vmem:[#allocation10] sm:$0xff] %v382_v22 }
 0x14d   :  { %v369_v23 = vpop.f32.mrf.mxu2 }
 0x14e   :  { %v370_v24 = vadd.f32 %v583_v18, %v369_v23  ;;  %v383_v25 = vpop.f32.mrf.mxu3 }
 0x150   :  { %v384_v26 = vadd.f32 %v383_v25, %v370_v24 }
 0x152   :  { %387 = vst [vmem:[#allocation10 + $0x8] sm:$0xff] %v384_v26 }
 0x153   :  { %400 = dma.vmem_to_hbm [thread:$0]  %s393_s16, 256, %s395_s19, [#allocation4], %s713_s26, %s713_s26, %s714_s27  }
 0x154   :  { %710 = dma.done.wait [#allocation4], 256  }
 0x155   :  { %711 = vsyncadd [#allocation4], 4294967040 }
 0x156   :  { %405 = vsyncpa [#allocation3], 1 }
 0x157   :  { %406 = vsyncpa [#allocation6], 1 }
 0x158   :  { %407 = vsyncpa [#allocation9], 1 }
 0x159   :  { %408 = vsyncpa [#allocation4], 1 }

</bundles_post_ra>
